<compile_context>
chip_gen: v6e
topology: v6e:2x2x1
jax: 0.10.0
libtpu: 0.0.40
codegen_flags: <defaults>
</compile_context>

<pallas_src>
import functools

import jax
import jax.numpy as jnp
from jax.experimental import pallas as pl
from jax.experimental.pallas import tpu as pltpu

INPUT_DIM = 141
OUTPUT_DIM = 128
NUM_HEADS = 4            # kept for fidelity with the module; unused at seq_len=1
HEAD_DIM = OUTPUT_DIM // NUM_HEADS


# ---------------------------------------------------------------------------
# Kernel: one tile of rows -> x @ W + b  (everything else is folded into W, b)
# ---------------------------------------------------------------------------
def _linear_kernel(x_ref, w_ref, b_ref, o_ref, *, compute_dtype):
    x = x_ref[...].astype(compute_dtype)
    w = w_ref[...].astype(compute_dtype)
    o_ref[...] = (
        jnp.dot(x, w, preferred_element_type=jnp.float32) + b_ref[...]
    ).astype(o_ref.dtype)


# ---------------------------------------------------------------------------
# Weight folding (hoistable / cacheable per (params, guidance))
# ---------------------------------------------------------------------------
def fold_params(params, guidance=None):
    """Collapse projection + (seq_len==1) MHA + weight_factor into one (W, b)."""
    use_attn = False
    wf = None
    if guidance and 'projection_adjustment' in guidance:
        adj = guidance['projection_adjustment']
        use_attn = bool(adj.get('use_attention', False))
        if 'weight_factor' in adj:
            wf = float(adj['weight_factor'])

    w = params['w_proj']          # [141, 128]  (pre-transposed [in, out])
    b = params['b_proj']          # [1, 128]
    if use_attn:
        # seq_len == 1  ->  softmax attention weights are exactly 1
        #                ->  MHA(p,p,p) == (p @ wv + bv) @ wo + bo
        w2 = params['wv'] @ params['wo']                    # [128, 128]
        b2 = params['bv'] @ params['wo'] + params['bo']     # [1, 128]
        w = w @ w2
        b = b @ w2 + b2
    if wf is not None:
        w = w * wf
        b = b * wf
    return w, b


# ---------------------------------------------------------------------------
# Wrapper
# ---------------------------------------------------------------------------
def projection_adapter_forward(features, params, guidance=None, *,
                               tb=2048,
                               compute_dtype=jnp.float32,
                               out_dtype=jnp.float32,
                               folded=None):
    B, in_dim = features.shape
    assert in_dim == INPUT_DIM

    # Folded (W, b) may be precomputed/cached by the caller via fold_params().
    w, b = folded if folded is not None else fold_params(params, guidance)

    # ---- row tiling (no padding; Pallas handles the ragged last block) -----
    if B > tb:
        tile = tb                                   # large B: 2048-row tiles
    elif B > 256:
        tile = ((pl.cdiv(B, 2) + 7) // 8) * 8       # >=2 blocks -> both v7x TCs
    else:
        tile = max(8, ((B + 7) // 8) * 8)           # one sublane-aligned block
    grid = pl.cdiv(B, tile)

    cost = pl.CostEstimate(
        flops=2 * B * INPUT_DIM * OUTPUT_DIM,
        transcendentals=0,
        bytes_accessed=(B * (INPUT_DIM + OUTPUT_DIM) * 4
                        + (INPUT_DIM + 1) * OUTPUT_DIM * 4),
    )

    out = pl.pallas_call(
        functools.partial(_linear_kernel, compute_dtype=compute_dtype),
        out_shape=jax.ShapeDtypeStruct((B, OUTPUT_DIM), out_dtype),
        grid=(grid,),
        in_specs=[
            pl.BlockSpec((tile, INPUT_DIM), lambda i: (i, 0)),
            pl.BlockSpec((INPUT_DIM, OUTPUT_DIM), lambda i: (0, 0)),
            pl.BlockSpec((1, OUTPUT_DIM), lambda i: (0, 0)),
        ],
        out_specs=pl.BlockSpec((tile, OUTPUT_DIM), lambda i: (i, 0)),
        compiler_params=pltpu.CompilerParams(
            dimension_semantics=("parallel",)),
        cost_estimate=cost,
    )(features, w, b)
    return out


# ---------------------------------------------------------------------------
# Deterministic parameter init (shapes from the module's __init__)
# ---------------------------------------------------------------------------
def init_params(key):
    keys = jax.random.split(key, 10)

    def w(k, shape, scale=0.02):
        return scale * jax.random.normal(k, shape, jnp.float32)

    # PyTorch Linear weights are [out, in]; stored pre-transposed [in, out].
    return dict(
        w_proj=w(keys[0], (INPUT_DIM, OUTPUT_DIM)),
        b_proj=w(keys[1], (1, OUTPUT_DIM)),
        # MHA in-proj / out-proj.  wq/wk/bq/bk are part of the module but are
        # mathematical no-ops for seq_len == 1 and never enter the kernel.
        wq=w(keys[2], (OUTPUT_DIM, OUTPUT_DIM)),
        wk=w(keys[3], (OUTPUT_DIM, OUTPUT_DIM)),
        wv=w(keys[4], (OUTPUT_DIM, OUTPUT_DIM)),
        bq=w(keys[5], (1, OUTPUT_DIM)),
        bk=w(keys[6], (1, OUTPUT_DIM)),
        bv=w(keys[7], (1, OUTPUT_DIM)),
        wo=w(keys[8], (OUTPUT_DIM, OUTPUT_DIM)),
        bo=w(keys[9], (1, OUTPUT_DIM)),
        # adaptive_weight exists in the module but is never used in forward().
        adaptive_weight=jnp.float32(1.0),
    )


def reference_forward(features, params, guidance=None):
    """Plain-JAX reference mirroring the PyTorch forward (un-folded chain)."""
    p = features @ params['w_proj'] + params['b_proj']
    if guidance and 'projection_adjustment' in guidance:
        adj = guidance['projection_adjustment']
        if adj.get('use_attention'):
            # seq_len == 1 -> softmax weights are exactly 1 -> attended == v
            v = p @ params['wv'] + params['bv']
            p = v @ params['wo'] + params['bo']
        if 'weight_factor' in adj:
            p = p * adj['weight_factor']
    return p


if __name__ == "__main__":
    key = jax.random.PRNGKey(0)
    pkey, xkey = jax.random.split(key)
    params = init_params(pkey)

    B = 8
    features = jax.random.normal(xkey, (B, INPUT_DIM), jnp.float32)
    # Medium batch to exercise the grid>=2 (dual-TensorCore) branch and the
    # ragged-last-block (no-pad) path: 300 rows, tile=152 -> grid=2, last block
    # partial.
    features_med = jax.random.normal(jax.random.fold_in(xkey, 1),
                                     (300, INPUT_DIM), jnp.float32)

    guidance = {'projection_adjustment': {'use_attention': True,
                                          'weight_factor': 0.5}}
    # Fold once (cacheable) and reuse across calls with the same guidance.
    folded_attn = fold_params(params, guidance)

    # path 1: no guidance (plain projection)
    out_plain = projection_adapter_forward(features, params)
    # path 2: guidance with attention + weight factor (folded into one matmul)
    out_attn = projection_adapter_forward(features, params, guidance,
                                          folded=folded_attn)
    # path 3: non-multiple-of-8 batch -> single partial block, no padding
    out_odd = projection_adapter_forward(features[:6], params, guidance,
                                         folded=folded_attn)
    # path 4: medium batch -> grid=2, ragged last block
    out_med = projection_adapter_forward(features_med, params, guidance,
                                         folded=folded_attn)
    jax.block_until_ready((out_plain, out_attn, out_odd, out_med))

    ref_plain = reference_forward(features, params)
    ref_attn = reference_forward(features, params, guidance)
    ref_med = reference_forward(features_med, params, guidance)
    assert out_plain.shape == (B, OUTPUT_DIM)
    assert out_attn.shape == (B, OUTPUT_DIM)
    assert out_odd.shape == (6, OUTPUT_DIM)
    assert out_med.shape == (300, OUTPUT_DIM)
    assert jnp.allclose(out_plain, ref_plain, atol=1e-4, rtol=1e-4)
    assert jnp.allclose(out_attn, ref_attn, atol=1e-4, rtol=1e-4)
    assert jnp.allclose(out_odd, ref_attn[:6], atol=1e-4, rtol=1e-4)
    assert jnp.allclose(out_med, ref_med, atol=1e-4, rtol=1e-4)
    print("KERNEL_OK")
</pallas_src>

<mosaic_0001>
module attributes {stable_mosaic.version = 11 : i64} {
  func.func @_linear_kernel(%arg0: i32, %arg1: memref<8x141xf32, #tpu.memory_space<vmem>>, %arg2: memref<141x128xf32, #tpu.memory_space<vmem>>, %arg3: memref<1x128xf32, #tpu.memory_space<vmem>>, %arg4: memref<8x128xf32, #tpu.memory_space<vmem>>) attributes {dimension_semantics = [#tpu.dimension_semantics<parallel>], iteration_bounds = array<i64: 1>, scalar_prefetch = 0 : i64, scratch_operands = 0 : i64, tpu.core_type = #tpu.core_type<tc>, window_params = [{transform_indices = @transform_0, window_bounds = array<i64: 8, 141>}, {pipeline_mode = #tpu.pipeline_mode<synchronous>, transform_indices = @transform_1, window_bounds = array<i64: 141, 128>}, {pipeline_mode = #tpu.pipeline_mode<synchronous>, transform_indices = @transform_2, window_bounds = array<i64: 1, 128>}, {transform_indices = @transform_3, window_bounds = array<i64: 8, 128>}]} {
    %c0 = arith.constant 0 : index
    %c0_0 = arith.constant 0 : index
    %0 = vector.load %arg1[%c0, %c0_0] : memref<8x141xf32, #tpu.memory_space<vmem>>, vector<8x141xf32>
    %c0_1 = arith.constant 0 : index
    %c0_2 = arith.constant 0 : index
    %1 = vector.load %arg2[%c0_1, %c0_2] : memref<141x128xf32, #tpu.memory_space<vmem>>, vector<141x128xf32>
    %cst = arith.constant dense<0.000000e+00> : vector<8x128xf32>
    %2 = tpu.matmul %0, %1, %cst {dimension_numbers = #tpu.dot_dimension_numbers<[1], [0], [0], [1], [0, 0, 1, 1], [], []>} : vector<8x141xf32>, vector<141x128xf32>, vector<8x128xf32> -> vector<8x128xf32>
    %c0_3 = arith.constant 0 : index
    %c0_4 = arith.constant 0 : index
    %3 = vector.load %arg3[%c0_3, %c0_4] : memref<1x128xf32, #tpu.memory_space<vmem>>, vector<1x128xf32>
    %4 = vector.broadcast %3 : vector<1x128xf32> to vector<8x128xf32>
    %5 = arith.addf %2, %4 : vector<8x128xf32>
    %c0_5 = arith.constant 0 : index
    %c0_6 = arith.constant 0 : index
    %6 = vector.load %arg4[%c0_5, %c0_6] : memref<8x128xf32, #tpu.memory_space<vmem>>, vector<8x128xf32>
    tpu.vector_store %arg4[%c0_5, %c0_6], %5 {strides = array<i32>} : memref<8x128xf32, #tpu.memory_space<vmem>>, vector<8x128xf32>,
    return
  }
  func.func @transform_0(%arg0: i32) -> (i32, i32) {
    %c0_i32 = arith.constant 0 : i32
    %c0_i32_0 = arith.constant 0 : i32
    return %arg0, %c0_i32 : i32, i32
  }
  func.func @transform_1(%arg0: i32) -> (i32, i32) {
    %c0_i32 = arith.constant 0 : i32
    %c0_i32_0 = arith.constant 0 : i32
    %c0_i32_1 = arith.constant 0 : i32
    return %c0_i32, %c0_i32_0 : i32, i32
  }
  func.func @transform_2(%arg0: i32) -> (i32, i32) {
    %c0_i32 = arith.constant 0 : i32
    %c0_i32_0 = arith.constant 0 : i32
    %c0_i32_1 = arith.constant 0 : i32
    return %c0_i32, %c0_i32_0 : i32, i32
  }
  func.func @transform_3(%arg0: i32) -> (i32, i32) {
    %c0_i32 = arith.constant 0 : i32
    %c0_i32_0 = arith.constant 0 : i32
    return %arg0, %c0_i32 : i32, i32
  }
}

</mosaic_0001>

<bundles_post_ra>
// kernel: tpu_custom_call.1
= control target key start
LH: loop header
LB: loop body
LE: loop exit
PB: predicated region body
PF: predicated region fallthrough
CT: control target
= control target key end

     0   :  { %8 = vsyncpa [#allocation3], 0  ;;  %s276_s0 = inlined_call_operand.hbm [shape: f32[8,141], index: 0, kind: input, shape index: {}]   ;;  %s277_s1 = inlined_call_operand.hbm [shape: f32[141,128], index: 1, kind: input, shape index: {}]   ;;  %s278_s2 = inlined_call_operand.vmem [shape: f32[1,128], index: 2, kind: input, shape index: {}]   ;;  %s279_s3 = inlined_call_operand.hbm [shape: f32[8,128], index: 3, kind: output, shape index: {}]  }
   0x1   :  { %9 = vsyncpa [#allocation6], 0 }
   0x2   :  { %10 = vsyncpa [#allocation4], 0  ;;  %s238_s12 = smov [#allocation2]   ;;  %s239_s14 = smov [#allocation5]  }
   0x3   :  { %s17_s13 = sshll.u32 %s238_s12, 4  ;;  %s26_s15 = sshll.u32 %s239_s14, 4  ;;  %s18_s13 = int_to_ptr.vmem [resolvable:$true] %s17_s13  ;;  %s27_s15 = int_to_ptr.vmem [resolvable:$true] %s26_s15 }
   0x4   :  { %s180_s16 = scalar_lea.vmem %s18_s13, 256  ;;  %p185_p1 = scmp.lt.s32.totalorder %s18_s13, %s18_s13 }
   0x5   :  { %p181_p0 = scmp.ne.s32.totalorder %s18_s13, %s180_s16  ;;  %p186_p2 = scmp.lt.s32.totalorder %s180_s16, %s180_s16 }
   0x7   :  { %p187_p3 = por %p186_p2, %p185_p1 }
   0x9   :  { %p188_p4 = pnand %p187_p3, %p181_p0 }
   0xb   :  { %191 = shalt.err (!%p188_p4)
}
   0xc   :  { %20 = dma.hbm_to_vmem [thread:$0]  %s276_s0, 256, %s18_s13, [#allocation3]  }
   0xd   :  { %s200_s19 = scalar_lea.vmem %s27_s15, 2304  ;;  %p205_p6 = scmp.lt.s32.totalorder %s27_s15, %s27_s15 }
   0xe   :  { %p201_p5 = scmp.ne.s32.totalorder %s27_s15, %s200_s19  ;;  %p206_p7 = scmp.lt.s32.totalorder %s200_s19, %s200_s19 }
  0x10   :  { %p207_p8 = por %p206_p7, %p205_p6 }
  0x12   :  { %p208_p9 = pnand %p207_p8, %p201_p5 }
  0x14   :  { %211 = shalt.err (!%p208_p9)
}
  0x15   :  { %s240_s20 = smov 128   ;;  %s241_s21 = smov 8  }
  0x16   :  { %32 = dma.hbm_to_vmem [thread:$0]  %s277_s1, 2304, %s27_s15, [#allocation6], %s240_s20, %s240_s20, %s241_s21  }
  0x17   :  { %232 = dma.done.wait [#allocation3], 256  }
  0x18   :  { %233 = vsyncadd [#allocation3], 4294967040 }
  0x19   :  { %234 = dma.done.wait [#allocation6], 2304  }
  0x1a   :  { %235 = vsyncadd [#allocation6], 4294964992  ;;  %v242_v0 = vmov 0.0   ;;  %v58_v1 = vld [vmem:[#allocation5 + $0x78] sm:$0xff]  ;;  %v57_v2 = vld [vmem:[#allocation5 + $0x70] sm:$0xff]  ;;  %vm68_vm0 = vcmask 105472  }
  0x1b   :  { %76 = vmatprep.subr.mxu0 %v242_v0  ;;  %v56_v3 = vld [vmem:[#allocation5 + $0x68] sm:$0xff]  ;;  %v55_v4 = vld [vmem:[#allocation5 + $0x60] sm:$0xff]  ;;  %v54_v5 = vld [vmem:[#allocation5 + $0x58] sm:$0xff]  ;;  %vm72_vm1 = vcmask 1044480   ;;  %s243_s24 = smov [#allocation7]  }
  0x1c   :  { %77 = vmatpush1.msra.mxu0 %v58_v1  ;;  %v42_v6 = vld [vmem:[#allocation2 + $0x8] sm:$0xff]  ;;  %v53_v7 = vld [vmem:[#allocation5 + $0x50] sm:$0xff]  ;;  %v52_v8 = vld [vmem:[#allocation5 + $0x48] sm:$0xff]  ;;  %s153_s25 = sshll.u32 %s243_s24, 4  ;;  %s154_s25 = int_to_ptr.vmem [resolvable:$true] %s153_s25 }
  0x1d   :  { %78 = vmatprep.subr.mxu0 %v242_v0  ;;  %165 = vmatprep.mubr.msk.f32.mxu0 %vm68_vm0, %v42_v6  ;;  %v51_v9 = vld [vmem:[#allocation5 + $0x40] sm:$0xff]  ;;  %v50_v10 = vld [vmem:[#allocation5 + $0x38] sm:$0xff]  ;;  %v49_v11 = vld [vmem:[#allocation5 + $0x30] sm:$0xff]  ;;  %s212_s26 = scalar_lea.vmem %s154_s25, 128  ;;  %p217_p11 = scmp.lt.s32.totalorder %s154_s25, %s154_s25 }
  0x1e   :  { %79 = vmatpush1.msra.mxu0 %v57_v2  ;;  %v48_v12 = vld [vmem:[#allocation5 + $0x28] sm:$0xff]  ;;  %v47_v13 = vld [vmem:[#allocation5 + $0x20] sm:$0xff]  ;;  %v46_v14 = vld [vmem:[#allocation5 + $0x18] sm:$0xff]  ;;  %p213_p10 = scmp.ne.s32.totalorder %s154_s25, %s212_s26  ;;  %p218_p12 = scmp.lt.s32.totalorder %s212_s26, %s212_s26 }
  0x1f   :  { %80 = vmatprep.subr.mxu0 %v242_v0  ;;  %v45_v15 = vld [vmem:[#allocation5 + $0x10] sm:$0xff]  ;;  %v44_v16 = vld [vmem:[#allocation5 + $0x8] sm:$0xff]  ;;  %v43_v17 = vld [vmem:[#allocation5] sm:$0xff] }
  0x20   :  { %81 = vmatpush1.msra.mxu0 %v56_v3  ;;  %v60_v18 = vld [vmem:[#allocation5 + $0x88] sm:$0x1f]  ;;  %v59_v19 = vld [vmem:[#allocation5 + $0x80] sm:$0xff]  ;;  %v41_v20 = vld [vmem:[#allocation2] sm:$0xff]  ;;  %p219_p13 = por %p218_p12, %p217_p11 }
  0x21   :  { %82 = vmatprep.subr.mxu0 %v242_v0  ;;  %v163_v21 = vld [vmem:[%s278_s2] ss:$0 sm:$0xff] }
  0x22   :  { %83 = vmatpush1.msra.mxu0 %v55_v4  ;;  %p220_p0 = pnand %p219_p13, %p213_p10 }
  0x23   :  { %84 = vmatprep.subr.mxu0 %v242_v0 }
  0x24   :  { %85 = vmatpush1.msra.mxu0 %v54_v5 }
  0x25   :  { %86 = vmatprep.subr.mxu0 %v242_v0 }
  0x26   :  { %87 = vmatpush1.msra.mxu0 %v53_v7 }
  0x27   :  { %88 = vmatprep.subr.mxu0 %v242_v0 }
  0x28   :  { %89 = vmatpush1.msra.mxu0 %v52_v8 }
  0x29   :  { %90 = vmatprep.subr.mxu0 %v242_v0 }
  0x2a   :  { %91 = vmatpush1.msra.mxu0 %v51_v9 }
  0x2b   :  { %92 = vmatprep.subr.mxu0 %v242_v0 }
  0x2c   :  { %93 = vmatpush1.msra.mxu0 %v50_v10 }
  0x2d   :  { %94 = vmatprep.subr.mxu0 %v242_v0 }
  0x2e   :  { %95 = vmatpush1.msra.mxu0 %v49_v11 }
  0x2f   :  { %96 = vmatprep.subr.mxu0 %v242_v0 }
  0x30   :  { %97 = vmatpush1.msra.mxu0 %v48_v12 }
  0x31   :  { %98 = vmatprep.subr.mxu0 %v242_v0 }
  0x32   :  { %99 = vmatpush1.msra.mxu0 %v47_v13 }
  0x33   :  { %100 = vmatprep.subr.mxu0 %v242_v0 }
  0x34   :  { %101 = vmatpush1.msra.mxu0 %v46_v14 }
  0x35   :  { %102 = vmatprep.subr.mxu0 %v242_v0 }
  0x36   :  { %103 = vmatpush1.msra.mxu0 %v45_v15 }
  0x37   :  { %104 = vmatprep.subr.mxu0 %v242_v0 }
  0x38   :  { %105 = vmatpush1.msra.mxu0 %v44_v16 }
  0x39   :  { %106 = vmatprep.subr.mxu0 %v242_v0 }
  0x3a   :  { %107 = vmatpush1.msra.mxu0 %v43_v17 }
  0x3b   :  { %136 = vmatprep.subr.mxu0 %v242_v0 }
  0x3c   :  { %164 = vmatpush2.msk.msra.mxu0 %vm72_vm1, %v60_v18 }
  0x3d   :  { %138 = vmatprep.subr.mxu0 %v242_v0 }
  0x3e   :  { %139 = vmatpush2.msra.mxu0 %v59_v19 }
  0x3f   :  { %141 = vmatmul.mubr.f32.vlgmr.msra.gmra.mxu0 %v41_v20 }
  0xff   :  { %v142_v22 = vpop.f32.mrf.mxu0 }
 0x100   :  { %v143_v23 = vadd.f32 %v163_v21, %v142_v22 }
 0x101   :  { %v144_v24 = vpop.f32.mrf.mxu0 }
 0x102   :  { %146 = vst [vmem:[#allocation7] sm:$0xff] %v143_v23 }
 0x103   :  { %223 = shalt.err (!%p220_p0)
}
 0x104   :  { %156 = dma.vmem_to_hbm [thread:$0]  %s154_s25, 128, %s279_s3, [#allocation4]  }
 0x105   :  { %236 = dma.done.wait [#allocation4], 128  }
 0x106   :  { %237 = vsyncadd [#allocation4], 4294967168 }
 0x107   :  { %160 = vsyncpa [#allocation3], 1 }
 0x108   :  { %161 = vsyncpa [#allocation6], 1 }
 0x109   :  { %162 = vsyncpa [#allocation4], 1 }

</bundles_post_ra>
